<compile_context>
chip_gen: v6e
topology: v6e:2x2x1
jax: 0.10.0
libtpu: 0.0.40
codegen_flags: <defaults>
</compile_context>

<pallas_src>
import jax
import jax.numpy as jnp
from jax.experimental import pallas as pl
from jax.experimental.pallas import tpu as pltpu


def noisy_dqn_kernel(xT_ref, w1_ref, b1_ref, nw_ref, nb_ref,
                     eps_w_ref, eps_b_ref, o_ref):
    # fc1 + relu with the batch on the lane axis: hT = relu(W1 @ xT + b1) [H,TB]
    hT = jnp.dot(w1_ref[...], xT_ref[...], preferred_element_type=jnp.float32)
    hT = jnp.maximum(hT + b1_ref[...], 0.0)

    # Noisy-linear combine, kept in f32 (sigma = 0.017 perturbations are too
    # small for an all-bf16 combine). One [8,128] vreg of FMAs per grid step:
    # cheap enough to redo per step, which keeps eps identical on every batch
    # tile and on both v7x cores with no cross-step state.
    w2 = nw_ref[0] + nw_ref[1] * eps_w_ref[...]          # [A, H] f32
    b2 = nb_ref[0] + nb_ref[1] * eps_b_ref[...]          # [A, 1] f32

    # outT = W2 @ hT + b2 : [A, TB] -- lane-dense output block.
    outT = jnp.dot(w2.astype(jnp.bfloat16), hT.astype(jnp.bfloat16),
                   preferred_element_type=jnp.float32)
    o_ref[...] = (outT + b2).astype(o_ref.dtype)


def _pick_batch_tile(B):
    if B <= 256:
        return B                     # single grid step; block = full batch extent
    # >= 2 grid steps (so the "parallel" axis engages both v7x TensorCores);
    # tile is a multiple of 128 (lane-dense blocks), capped at 1024.
    half = (B + 1) // 2
    return max(128, min(1024, (half // 128) * 128))


def noisy_dqn_forward(x, params, key):
    """x: [B, S] float. params: dict (see init_params). key: jax PRNG key."""
    B, S = x.shape
    H = params["w1"].shape[0]
    A = params["noisy_w"].shape[1]

    # Per-forward noise, shared by the whole batch (torch.randn_like semantics).
    # TODO(synk): not bit-identical to torch's Philox stream (statistically
    # equivalent only).
    k_w, k_b = jax.random.split(key)
    eps_w = jax.random.normal(k_w, (A, H), jnp.float32)
    eps_b = jax.random.normal(k_b, (A, 1), jnp.float32)

    # Batch on the lane axis; bf16 MXU operand (f32 accumulation in-kernel).
    xT = x.T.astype(jnp.bfloat16)                        # [S, B]

    TB = _pick_batch_tile(B)
    grid = (pl.cdiv(B, TB),)

    outT = pl.pallas_call(
        noisy_dqn_kernel,
        out_shape=jax.ShapeDtypeStruct((A, B), jnp.float32),
        grid=grid,
        in_specs=[
            pl.BlockSpec((S, TB), lambda i: (0, i)),        # xT (streamed tile)
            pl.BlockSpec((H, S), lambda i: (0, 0)),         # w1 (VMEM-resident)
            pl.BlockSpec((H, 1), lambda i: (0, 0)),         # b1
            pl.BlockSpec((2, A, H), lambda i: (0, 0, 0)),   # mu/sigma w
            pl.BlockSpec((2, A, 1), lambda i: (0, 0, 0)),   # mu/sigma b
            pl.BlockSpec((A, H), lambda i: (0, 0)),         # eps_w
            pl.BlockSpec((A, 1), lambda i: (0, 0)),         # eps_b
        ],
        out_specs=pl.BlockSpec((A, TB), lambda i: (0, i)),  # lane-dense output
        compiler_params=pltpu.CompilerParams(
            dimension_semantics=("parallel",)),
    )(xT, params["w1"], params["b1"], params["noisy_w"], params["noisy_b"],
      eps_w, eps_b)

    return outT.T                                        # [B, A]


def init_params(key, state_dim, hidden, action_dim):
    """Synthetic init mirroring the PyTorch module's shapes/init.

    fc1   : Linear(state_dim, 128), weight kept in PyTorch [out, in] = [H, S]
            layout (stored bf16 as an MXU operand), bias as [H, 1].
    noisy : mu ~ N(0, 0.1), sigma = 0.017, stacked as
            noisy_w[2, A, H] = (mu_w, sigma_w), noisy_b[2, A, 1] = (mu_b, sigma_b).
    """
    k1, k2, k3, k4 = jax.random.split(key, 4)
    bound = 1.0 / jnp.sqrt(jnp.float32(state_dim))
    w1 = jax.random.uniform(k1, (hidden, state_dim), jnp.float32,
                            minval=-bound, maxval=bound)
    b1 = jax.random.uniform(k2, (hidden, 1), jnp.float32,
                            minval=-bound, maxval=bound)
    mu_w = 0.1 * jax.random.normal(k3, (action_dim, hidden), jnp.float32)
    sigma_w = jnp.full((action_dim, hidden), 0.017, jnp.float32)
    mu_b = 0.1 * jax.random.normal(k4, (action_dim, 1), jnp.float32)
    sigma_b = jnp.full((action_dim, 1), 0.017, jnp.float32)
    return {
        "w1": w1.astype(jnp.bfloat16),           # [H, S] bf16
        "b1": b1,                                # [H, 1] f32
        "noisy_w": jnp.stack([mu_w, sigma_w]),   # [2, A, H] f32
        "noisy_b": jnp.stack([mu_b, sigma_b]),   # [2, A, 1] f32
    }


def ref_forward(x, params, eps_w, eps_b):
    """Pure-JAX reference using the same bf16-operand / f32-accum recipe."""
    xT = x.T.astype(jnp.bfloat16)
    hT = jnp.maximum(
        jnp.dot(params["w1"], xT, preferred_element_type=jnp.float32)
        + params["b1"], 0.0)
    w2 = params["noisy_w"][0] + params["noisy_w"][1] * eps_w
    b2 = params["noisy_b"][0] + params["noisy_b"][1] * eps_b
    outT = jnp.dot(w2.astype(jnp.bfloat16), hT.astype(jnp.bfloat16),
                   preferred_element_type=jnp.float32) + b2
    return outT.T


if __name__ == "__main__":
    B, S, H, A = 8, 16, 128, 8   # batch, state_dim, hidden (fixed by module), action_dim

    root = jax.random.PRNGKey(0)
    k_params, k_x, k_noise_a, k_noise_b = jax.random.split(root, 4)
    params = init_params(k_params, S, H, A)
    x = jax.random.normal(k_x, (B, S), dtype=jnp.float32)

    # 1) Deterministic-path check: with sigma == 0 the noise term vanishes, so
    #    the kernel must match a pure-JAX mu-only reference.
    params_det = dict(params)
    params_det["noisy_w"] = params["noisy_w"].at[1].set(0.0)
    params_det["noisy_b"] = params["noisy_b"].at[1].set(0.0)
    out_det = jax.block_until_ready(noisy_dqn_forward(x, params_det, k_noise_a))
    ref_det = ref_forward(x, params_det,
                          jnp.zeros((A, H), jnp.float32),
                          jnp.zeros((A, 1), jnp.float32))
    assert out_det.shape == (B, A)
    assert jnp.allclose(out_det, ref_det, atol=1e-3, rtol=1e-3)

    # 2) Noisy path: finite, reproducible for a fixed key, key-dependent, and a
    #    small perturbation of the deterministic path (sigma = 0.017).
    out_a = jax.block_until_ready(noisy_dqn_forward(x, params, k_noise_a))
    out_a2 = jax.block_until_ready(noisy_dqn_forward(x, params, k_noise_a))
    out_b = jax.block_until_ready(noisy_dqn_forward(x, params, k_noise_b))

    assert jnp.all(jnp.isfinite(out_a))
    assert jnp.array_equal(out_a, out_a2)            # same key  -> same noise
    assert not jnp.array_equal(out_a, out_b)         # key actually matters
    assert not jnp.array_equal(out_a, out_det)       # noise actually applied
    assert jnp.max(jnp.abs(out_a - out_det)) < 2.0   # noise magnitude sane

    print("KERNEL_OK")
</pallas_src>

<mosaic_0001>
module attributes {stable_mosaic.version = 11 : i64} {
  func.func @noisy_dqn_kernel(%arg0: i32, %arg1: memref<16x8xbf16, #tpu.memory_space<vmem>>, %arg2: memref<128x16xbf16, #tpu.memory_space<vmem>>, %arg3: memref<128x1xf32, #tpu.memory_space<vmem>>, %arg4: memref<2x8x128xf32, #tpu.memory_space<vmem>>, %arg5: memref<2x8x1xf32, #tpu.memory_space<vmem>>, %arg6: memref<8x128xf32, #tpu.memory_space<vmem>>, %arg7: memref<8x1xf32, #tpu.memory_space<vmem>>, %arg8: memref<8x8xf32, #tpu.memory_space<vmem>>) attributes {dimension_semantics = [#tpu.dimension_semantics<parallel>], iteration_bounds = array<i64: 1>, scalar_prefetch = 0 : i64, scratch_operands = 0 : i64, tpu.core_type = #tpu.core_type<tc>, window_params = [{transform_indices = @transform_0, window_bounds = array<i64: 16, 8>}, {pipeline_mode = #tpu.pipeline_mode<synchronous>, transform_indices = @transform_1, window_bounds = array<i64: 128, 16>}, {pipeline_mode = #tpu.pipeline_mode<synchronous>, transform_indices = @transform_2, window_bounds = array<i64: 128, 1>}, {pipeline_mode = #tpu.pipeline_mode<synchronous>, transform_indices = @transform_3, window_bounds = array<i64: 2, 8, 128>}, {pipeline_mode = #tpu.pipeline_mode<synchronous>, transform_indices = @transform_4, window_bounds = array<i64: 2, 8, 1>}, {pipeline_mode = #tpu.pipeline_mode<synchronous>, transform_indices = @transform_5, window_bounds = array<i64: 8, 128>}, {pipeline_mode = #tpu.pipeline_mode<synchronous>, transform_indices = @transform_6, window_bounds = array<i64: 8, 1>}, {transform_indices = @transform_7, window_bounds = array<i64: 8, 8>}]} {
    %c0 = arith.constant 0 : index
    %c0_0 = arith.constant 0 : index
    %0 = vector.load %arg2[%c0, %c0_0] : memref<128x16xbf16, #tpu.memory_space<vmem>>, vector<128x16xbf16>
    %c0_1 = arith.constant 0 : index
    %c0_2 = arith.constant 0 : index
    %1 = vector.load %arg1[%c0_1, %c0_2] : memref<16x8xbf16, #tpu.memory_space<vmem>>, vector<16x8xbf16>
    %cst = arith.constant dense<0.000000e+00> : vector<128x8xf32>
    %2 = tpu.matmul %0, %1, %cst {dimension_numbers = #tpu.dot_dimension_numbers<[1], [0], [0], [1], [0, 0, 1, 1], [], []>} : vector<128x16xbf16>, vector<16x8xbf16>, vector<128x8xf32> -> vector<128x8xf32>
    %c0_3 = arith.constant 0 : index
    %c0_4 = arith.constant 0 : index
    %3 = vector.load %arg3[%c0_3, %c0_4] : memref<128x1xf32, #tpu.memory_space<vmem>>, vector<128x1xf32>
    %4 = vector.broadcast %3 : vector<128x1xf32> to vector<128x8xf32>
    %5 = arith.addf %2, %4 : vector<128x8xf32>
    %cst_5 = arith.constant 0.000000e+00 : f32
    %6 = vector.broadcast %cst_5 : f32 to vector<128x8xf32>
    %7 = arith.maximumf %5, %6 : vector<128x8xf32>
    %c0_6 = arith.constant 0 : index
    %c0_7 = arith.constant 0 : index
    %c0_8 = arith.constant 0 : index
    %8 = vector.load %arg4[%c0_6, %c0_7, %c0_8] : memref<2x8x128xf32, #tpu.memory_space<vmem>>, vector<1x8x128xf32>
    %9 = vector.shape_cast %8 : vector<1x8x128xf32> to vector<8x128xf32>
    %c1 = arith.constant 1 : index
    %c0_9 = arith.constant 0 : index
    %c0_10 = arith.constant 0 : index
    %10 = vector.load %arg4[%c1, %c0_9, %c0_10] : memref<2x8x128xf32, #tpu.memory_space<vmem>>, vector<1x8x128xf32>
    %11 = vector.shape_cast %10 : vector<1x8x128xf32> to vector<8x128xf32>
    %c0_11 = arith.constant 0 : index
    %c0_12 = arith.constant 0 : index
    %12 = vector.load %arg6[%c0_11, %c0_12] : memref<8x128xf32, #tpu.memory_space<vmem>>, vector<8x128xf32>
    %13 = arith.mulf %11, %12 : vector<8x128xf32>
    %14 = arith.addf %9, %13 : vector<8x128xf32>
    %c0_13 = arith.constant 0 : index
    %c0_14 = arith.constant 0 : index
    %c0_15 = arith.constant 0 : index
    %15 = vector.load %arg5[%c0_13, %c0_14, %c0_15] : memref<2x8x1xf32, #tpu.memory_space<vmem>>, vector<1x8x1xf32>
    %16 = vector.shape_cast %15 : vector<1x8x1xf32> to vector<8x1xf32>
    %c1_16 = arith.constant 1 : index
    %c0_17 = arith.constant 0 : index
    %c0_18 = arith.constant 0 : index
    %17 = vector.load %arg5[%c1_16, %c0_17, %c0_18] : memref<2x8x1xf32, #tpu.memory_space<vmem>>, vector<1x8x1xf32>
    %18 = vector.shape_cast %17 : vector<1x8x1xf32> to vector<8x1xf32>
    %c0_19 = arith.constant 0 : index
    %c0_20 = arith.constant 0 : index
    %19 = vector.load %arg7[%c0_19, %c0_20] : memref<8x1xf32, #tpu.memory_space<vmem>>, vector<8x1xf32>
    %20 = arith.mulf %18, %19 : vector<8x1xf32>
    %21 = arith.addf %16, %20 : vector<8x1xf32>
    %22 = arith.truncf %14 : vector<8x128xf32> to vector<8x128xbf16>
    %23 = arith.truncf %7 : vector<128x8xf32> to vector<128x8xbf16>
    %cst_21 = arith.constant dense<0.000000e+00> : vector<8x8xf32>
    %24 = tpu.matmul %22, %23, %cst_21 {dimension_numbers = #tpu.dot_dimension_numbers<[1], [0], [0], [1], [0, 0, 1, 1], [], []>} : vector<8x128xbf16>, vector<128x8xbf16>, vector<8x8xf32> -> vector<8x8xf32>
    %25 = vector.broadcast %21 : vector<8x1xf32> to vector<8x8xf32>
    %26 = arith.addf %24, %25 : vector<8x8xf32>
    %c0_22 = arith.constant 0 : index
    %c0_23 = arith.constant 0 : index
    %27 = vector.load %arg8[%c0_22, %c0_23] : memref<8x8xf32, #tpu.memory_space<vmem>>, vector<8x8xf32>
    tpu.vector_store %arg8[%c0_22, %c0_23], %26 {strides = array<i32>} : memref<8x8xf32, #tpu.memory_space<vmem>>, vector<8x8xf32>,
    return
  }
  func.func @transform_0(%arg0: i32) -> (i32, i32) {
    %c0_i32 = arith.constant 0 : i32
    %c0_i32_0 = arith.constant 0 : i32
    return %c0_i32, %arg0 : i32, i32
  }
  func.func @transform_1(%arg0: i32) -> (i32, i32) {
    %c0_i32 = arith.constant 0 : i32
    %c0_i32_0 = arith.constant 0 : i32
    %c0_i32_1 = arith.constant 0 : i32
    return %c0_i32, %c0_i32_0 : i32, i32
  }
  func.func @transform_2(%arg0: i32) -> (i32, i32) {
    %c0_i32 = arith.constant 0 : i32
    %c0_i32_0 = arith.constant 0 : i32
    %c0_i32_1 = arith.constant 0 : i32
    return %c0_i32, %c0_i32_0 : i32, i32
  }
  func.func @transform_3(%arg0: i32) -> (i32, i32, i32) {
    %c0_i32 = arith.constant 0 : i32
    %c0_i32_0 = arith.constant 0 : i32
    %c0_i32_1 = arith.constant 0 : i32
    %c0_i32_2 = arith.constant 0 : i32
    return %c0_i32, %c0_i32_0, %c0_i32_1 : i32, i32, i32
  }
  func.func @transform_4(%arg0: i32) -> (i32, i32, i32) {
    %c0_i32 = arith.constant 0 : i32
    %c0_i32_0 = arith.constant 0 : i32
    %c0_i32_1 = arith.constant 0 : i32
    %c0_i32_2 = arith.constant 0 : i32
    return %c0_i32, %c0_i32_0, %c0_i32_1 : i32, i32, i32
  }
  func.func @transform_5(%arg0: i32) -> (i32, i32) {
    %c0_i32 = arith.constant 0 : i32
    %c0_i32_0 = arith.constant 0 : i32
    %c0_i32_1 = arith.constant 0 : i32
    return %c0_i32, %c0_i32_0 : i32, i32
  }
  func.func @transform_6(%arg0: i32) -> (i32, i32) {
    %c0_i32 = arith.constant 0 : i32
    %c0_i32_0 = arith.constant 0 : i32
    %c0_i32_1 = arith.constant 0 : i32
    return %c0_i32, %c0_i32_0 : i32, i32
  }
  func.func @transform_7(%arg0: i32) -> (i32, i32) {
    %c0_i32 = arith.constant 0 : i32
    %c0_i32_0 = arith.constant 0 : i32
    return %c0_i32, %arg0 : i32, i32
  }
}

</mosaic_0001>

<bundles_post_ra>
// kernel: tpu_custom_call.1
= control target key start
LH: loop header
LB: loop body
LE: loop exit
PB: predicated region body
PF: predicated region fallthrough
CT: control target
= control target key end

     0   :  { %vm188_vm0 = vcmask 130048   ;;  %v520_v3 = vmov 0   ;;  %s686_s0 = inlined_call_operand.vmem [shape: bf16[16,8], index: 0, kind: input, shape index: {}]   ;;  %s687_s1 = inlined_call_operand.vmem [shape: bf16[128,16], index: 1, kind: input, shape index: {}]   ;;  %s688_s2 = inlined_call_operand.vmem [shape: f32[128,1], index: 2, kind: input, shape index: {}]   ;;  %s689_s3 = inlined_call_operand.vmem [shape: f32[2,8,128], index: 3, kind: input, shape index: {}]   ;;  %s690_s4 = inlined_call_operand.vmem [shape: f32[2,8,1], index: 4, kind: input, shape index: {}]   ;;  %s691_s5 = inlined_call_operand.vmem [shape: f32[8,128], index: 5, kind: input, shape index: {}]   ;;  %s692_s6 = inlined_call_operand.vmem [shape: f32[8,1], index: 6, kind: input, shape index: {}]   ;;  %s693_s7 = inlined_call_operand.hbm [shape: f32[8,8], index: 7, kind: output, shape index: {}]  }
   0x1   :  { %v489_v0 = vld [vmem:[%s686_s0] sm:$0xff]   ;;  %v491_v2 = vld [vmem:[%s687_s1 + $0x8] sm:$0xff]   ;;  %487 = vset.pattern.permute.xlu0 %v520_v3  ;;  %v492_v4 = vld [vmem:[%s687_s1 + $0x10] sm:$0xff]   ;;  %488 = vset.pattern.permute.xlu1 %v520_v3 }
   0x2   :  { %v490_v1 = vld [vmem:[%s687_s1] sm:$0xff]   ;;  %445 = vmatprep.subr.bf16.mxu0 %v489_v0  ;;  %v60_v5 = vld [vmem:[%s688_s2 + $0x70] sm:$0xff]  ;;  %v493_v7 = vld [vmem:[%s687_s1 + $0x18] sm:$0xff]  }
   0x3   :  { %446 = vmatpush3.bf16.msra.mxu0 %v489_v0  ;;  %447 = vmatprep.mubr.msk.bf16.mxu0 %vm188_vm0, %v490_v1  ;;  %v58_v6 = vld [vmem:[%s688_s2 + $0x60] sm:$0xff]  ;;  %v61_v9 = vld [vmem:[%s688_s2 + $0x78] sm:$0xff]  ;;  %v59_v10 = vld [vmem:[%s688_s2 + $0x68] sm:$0xff] }
   0x4   :  { %134 = vperm.xlu0 %487, %v60_v5   ;;  %124 = vperm.xlu1 %488, %v58_v6   ;;  %v494_v8 = vld [vmem:[%s687_s1 + $0x20] sm:$0xff]   ;;  %v56_v11 = vld [vmem:[%s688_s2 + $0x50] sm:$0xff] }
   0x6   :  { %448 = vmatmul.mubr.msk.bf16.vlgmr.msra.gmra.mxu0 %vm188_vm0, %v491_v2 }
   0x7   :  { %451 = vmatprep.mubr.msk.bf16.mxu0 %vm188_vm0, %v492_v4 }
   0x8   :  { %139 = vperm.xlu0 %487, %v61_v9   ;;  %129 = vperm.xlu1 %488, %v59_v10  }
   0xe   :  { %452 = vmatmul.mubr.msk.bf16.gmra.mxu0 %vm188_vm0, %v493_v7 }
   0xf   :  { %455 = vmatprep.mubr.msk.bf16.mxu0 %vm188_vm0, %v494_v8 }
  0x10   :  { %12 = vsyncpa [#allocation3], 0  ;;  %v57_v12 = vld [vmem:[%s688_s2 + $0x58] sm:$0xff]  ;;  %v495_v13 = vld [vmem:[%s687_s1 + $0x28] sm:$0xff]   ;;  %114 = vperm.xlu0 %487, %v56_v11   ;;  %v521_v31 = vmov 0.0   ;;  %vm522_vm1 = vmmov 0  }
  0x11   :  { %v496_v14 = vld [vmem:[%s687_s1 + $0x30] sm:$0xff]   ;;  %119 = vperm.xlu1 %488, %v57_v12   ;;  %v54_v15 = vld [vmem:[%s688_s2 + $0x40] sm:$0xff]  ;;  %v55_v16 = vld [vmem:[%s688_s2 + $0x48] sm:$0xff]  ;;  %463 = vmatprep.subr.bf16.mxu1 %v521_v31  ;;  %vm392_vm2 = vcmask 64512  }
  0x12   :  { %v52_v17 = vld [vmem:[%s688_s2 + $0x30] sm:$0xff]  ;;  %v53_v18 = vld [vmem:[%s688_s2 + $0x38] sm:$0xff]  ;;  %v50_v20 = vld [vmem:[%s688_s2 + $0x20] sm:$0xff]  ;;  %479 = vmatprep.mubr.msk.bf16.mxu1 %vm522_vm1, %v521_v31 }
  0x13   :  { %v497_v19 = vld [vmem:[%s687_s1 + $0x38] sm:$0xff]   ;;  %v51_v21 = vld [vmem:[%s688_s2 + $0x28] sm:$0xff]  ;;  %v48_v22 = vld [vmem:[%s688_s2 + $0x10] sm:$0xff] }
  0x14   :  { %104 = vperm.xlu0 %487, %v54_v15   ;;  %v426_v23 = vld [vmem:[%s690_s4 + $0x8] sm:$0xff]  ;;  %v335_v24 = vld [vmem:[%s692_s6] sm:$0xff]  ;;  %v49_v25 = vld [vmem:[%s688_s2 + $0x18] sm:$0xff] }
  0x15   :  { %109 = vperm.xlu1 %488, %v55_v16   ;;  %v336_v26 = vmul.f32 %v426_v23, %v335_v24  ;;  %v46_v27 = vld [vmem:[%s688_s2] sm:$0xff]  ;;  %v47_v29 = vld [vmem:[%s688_s2 + $0x8] sm:$0xff] }
  0x16   :  { %456 = vmatmul.mubr.msk.bf16.gmra.mxu0 %vm188_vm0, %v495_v13  ;;  %v332_v28 = vld [vmem:[%s690_s4] sm:$0xff] }
  0x17   :  { %459 = vmatprep.mubr.msk.bf16.mxu0 %vm188_vm0, %v496_v14  ;;  %v337_v30 = vadd.f32 %v336_v26, %v332_v28 }
  0x18   :  { %94 = vperm.xlu0 %487, %v52_v17  }
  0x19   :  { %99 = vperm.xlu1 %488, %v53_v18  }
  0x1c   :  { %84 = vperm.xlu0 %487, %v50_v20  }
  0x1d   :  { %89 = vperm.xlu1 %488, %v51_v21  }
  0x1e   :  { %460 = vmatmul.mubr.msk.bf16.gmra.mxu0 %vm188_vm0, %v497_v19 }
  0x20   :  { %74 = vperm.xlu0 %487, %v48_v22  }
  0x21   :  { %79 = vperm.xlu1 %488, %v49_v25  }
  0x24   :  { %64 = vperm.xlu0 %487, %v46_v27  }
  0x25   :  { %69 = vperm.xlu1 %488, %v47_v29  }
  0x28   :  { %349 = vperm.xlu0 %487, %v337_v30   ;;  %v425_v30 = vld [vmem:[%s689_s3 + $0x8] sm:$0xff] }
  0x7f   :  { %v125_v36 = vpop.permute.xlu1 %124  ;;  %v135_v38 = vpop.permute.xlu0 %134 }
  0x83   :  { %v130_v41 = vpop.permute.xlu1 %129  ;;  %v140_v43 = vpop.permute.xlu0 %139 }
  0x8b   :  { %v115_v48 = vpop.permute.xlu0 %114 }
  0x8c   :  { %v120_v46 = vpop.permute.xlu1 %119 }
  0x8f   :  { %v105_v54 = vpop.permute.xlu0 %104 }
  0x90   :  { %v110_v51 = vpop.permute.xlu1 %109 }
  0x93   :  { %v95_v2 = vpop.permute.xlu0 %94 }
  0x94   :  { %v100_v62 = vpop.permute.xlu1 %99 }
  0x97   :  { %v85_v11 = vpop.permute.xlu0 %84 }
  0x98   :  { %v90_v8 = vpop.permute.xlu1 %89 }
  0x9b   :  { %v75_v21 = vpop.permute.xlu0 %74 }
  0x9c   :  { %v80_v17 = vpop.permute.xlu1 %79 }
  0xa0   :  { %v70_v27 = vpop.permute.xlu1 %69 }
  0xc6   :  { %v658_v32 = vpop.f32.mrf.mxu0 }
  0xc7   :  { %v256_v28 = vadd.f32 %v658_v32, %v75_v21 }
  0xc8   :  { %v660_v33 = vpop.f32.mrf.mxu0 }
  0xca   :  { %v450_v34 = vpop.f32.mrf.mxu0 }
  0xcb   :  { %v259_v24 = vadd.f32 %v450_v34, %v80_v17 }
  0xcc   :  { %v662_v35 = vpop.f32.mrf.mxu0 }
  0xcd   :  { %v251_v34 = vadd.f32 %v662_v35, %v70_v27 }
  0xce   :  { %v453_v37 = vpop.f32.mrf.mxu0 }
  0xcf   :  { %v272_v15 = vadd.f32 %v453_v37, %v95_v2  ;;  %v65_v37 = vpop.permute.xlu0 %64 }
  0xd0   :  { %v263_v39 = vpop.f32.mrf.mxu0  ;;  %v248_v32 = vadd.f32 %v660_v33, %v65_v37 }
  0xd1   :  { %v316_v22 = vmax.f32 %v272_v15, 0.0  ;;  %v264_v23 = vadd.f32 %v263_v39, %v85_v11 }
  0xd2   :  { %v454_v40 = vpop.f32.mrf.mxu0 }
  0xd3   :  { %v275_v12 = vadd.f32 %v454_v40, %v100_v62  ;;  %v314_v29 = vmax.f32 %v264_v23, 0.0  ;;  %v350_v33 = vpop.permute.xlu0 %349 }
  0xd4   :  { %v266_v42 = vpop.f32.mrf.mxu0 }
  0xd5   :  { %v317_v18 = vmax.f32 %v275_v12, 0.0  ;;  %v267_v19 = vadd.f32 %v266_v42, %v90_v8  ;;  %v326_v42 = vld [vmem:[%s689_s3] sm:$0xff] }
  0xd6   :  { %v457_v44 = vpop.f32.mrf.mxu0 }
  0xd7   :  { %v288_v3 = vadd.f32 %v457_v44, %v115_v48  ;;  %v342_v25 = vpack.c.bf16 %v317_v18, %v316_v22  ;;  %v315_v26 = vmax.f32 %v267_v19, 0.0  ;;  %v311_v44 = vmax.f32 %v251_v34, 0.0 }
  0xd8   :  { %v279_v45 = vpop.f32.mrf.mxu0 }
  0xd9   :  { %v320_v9 = vmax.f32 %v288_v3, 0.0  ;;  %v280_v10 = vadd.f32 %v279_v45, %v105_v54  ;;  %v341_v39 = vpack.c.bf16 %v315_v26, %v314_v29 }
  0xda   :  { %v458_v47 = vpop.f32.mrf.mxu0 }
  0xdb   :  { %v291_v63 = vadd.f32 %v458_v47, %v120_v46  ;;  %v318_v16 = vmax.f32 %v280_v10, 0.0  ;;  %v310_v46 = vmax.f32 %v248_v32, 0.0 }
  0xdc   :  { %v282_v49 = vpop.f32.mrf.mxu0 }
  0xdd   :  { %v321_v5 = vmax.f32 %v291_v63, 0.0  ;;  %v283_v6 = vadd.f32 %v282_v49, %v110_v51  ;;  %v339_v35 = vpack.c.bf16 %v311_v44, %v310_v46 }
  0xde   :  { %v461_v50 = vpop.f32.mrf.mxu0 }
  0xdf   :  { %v304_v53 = vadd.f32 %v461_v50, %v135_v38  ;;  %v344_v13 = vpack.c.bf16 %v321_v5, %v320_v9  ;;  %v319_v14 = vmax.f32 %v283_v6, 0.0  ;;  %v313_v38 = vmax.f32 %v259_v24, 0.0 }
  0xe0   :  { %v295_v52 = vpop.f32.mrf.mxu0 }
  0xe1   :  { %v324_v58 = vmax.f32 %v304_v53, 0.0  ;;  %v296_v59 = vadd.f32 %v295_v52, %v125_v36  ;;  %v343_v20 = vpack.c.bf16 %v319_v14, %v318_v16  ;;  %v329_v36 = vld [vmem:[%s691_s5] sm:$0xff]  ;;  %s523_s5 = smov [#allocation2]  }
  0xe2   :  { %v462_v55 = vpop.f32.mrf.mxu0  ;;  %v330_v40 = vmul.f32 %v425_v30, %v329_v36  ;;  %s400_s10 = sshll.u32 %s523_s5, 4  ;;  %s401_s10 = int_to_ptr.vmem [resolvable:$true] %s400_s10 }
  0xe3   :  { %v307_v56 = vadd.f32 %v462_v55, %v140_v43  ;;  %v322_v4 = vmax.f32 %v296_v59, 0.0  ;;  %s498_s3 = scalar_lea.vmem %s401_s10, 128  ;;  %p503_p1 = scmp.lt.s32.totalorder %s401_s10, %s401_s10 }
  0xe4   :  { %v298_v57 = vpop.f32.mrf.mxu0  ;;  %v331_v45 = vadd.f32 %v330_v40, %v326_v42  ;;  %p499_p0 = scmp.ne.s32.totalorder %s401_s10, %s498_s3  ;;  %p504_p2 = scmp.lt.s32.totalorder %s498_s3, %s498_s3 }
  0xe5   :  { %v325_v60 = vmax.f32 %v307_v56, 0.0  ;;  %v299_v61 = vadd.f32 %v298_v57, %v130_v41  ;;  %v312_v41 = vmax.f32 %v256_v28, 0.0 }
  0xe6   :  { %v338_v47 = vpack.c.bf16 %v331_v45, %v331_v45  ;;  %p505_p3 = por %p504_p2, %p503_p1 }
  0xe7   :  { %v323_v0 = vmax.f32 %v299_v61, 0.0  ;;  %v346_v1 = vpack.c.bf16 %v325_v60, %v324_v58  ;;  %v340_v43 = vpack.c.bf16 %v313_v38, %v312_v41 }
  0xe8   :  { %p506_p4 = pnand %p505_p3, %p499_p0 }
  0xe9   :  { %464 = vmatpush3.bf16.msra.mxu1 %v346_v1  ;;  %v345_v7 = vpack.c.bf16 %v323_v0, %v322_v4 }
  0xea   :  { %465 = vmatprep.subr.bf16.mxu1 %v521_v31 }
  0xed   :  { %466 = vmatpush3.bf16.msra.mxu1 %v345_v7 }
  0xee   :  { %467 = vmatprep.subr.bf16.mxu1 %v521_v31 }
  0xf1   :  { %468 = vmatpush3.bf16.msra.mxu1 %v344_v13 }
  0xf2   :  { %469 = vmatprep.subr.bf16.mxu1 %v521_v31 }
  0xf5   :  { %470 = vmatpush3.bf16.msra.mxu1 %v343_v20 }
  0xf6   :  { %471 = vmatprep.subr.bf16.mxu1 %v521_v31 }
  0xf9   :  { %472 = vmatpush3.bf16.msra.mxu1 %v342_v25 }
  0xfa   :  { %473 = vmatprep.subr.bf16.mxu1 %v521_v31 }
  0xfd   :  { %474 = vmatpush3.bf16.msra.mxu1 %v341_v39 }
  0xfe   :  { %475 = vmatprep.subr.bf16.mxu1 %v521_v31 }
 0x101   :  { %476 = vmatpush3.bf16.msra.mxu1 %v340_v43 }
 0x102   :  { %477 = vmatprep.subr.bf16.mxu1 %v521_v31 }
 0x105   :  { %478 = vmatpush3.bf16.msra.mxu1 %v339_v35 }
 0x108   :  { %480 = vmatmul.mubr.bf16.vlgmr.msra.gmra.mxu1 %v338_v47 }
 0x1c8   :  { %v386_v48 = vpop.f32.mrf.mxu1 }
 0x1c9   :  { %v387_v49 = vadd.f32 %v386_v48, %v350_v33 }
 0x1ca   :  { %v481_v50 = vpop.f32.mrf.mxu1 }
 0x1cb   :  { %393 = vst.msk [vmem:[#allocation2] sm:$0xff] %vm392_vm2, %v387_v49 }
 0x1cc   :  { %v389_v51 = vpop.f32.mrf.mxu1 }
 0x1cd   :  { %509 = shalt.err (!%p506_p4)
}
 0x1ce   :  { %403 = dma.vmem_to_hbm [thread:$0]  %s401_s10, 128, %s693_s7, [#allocation3]   ;;  %v482_v31 = vpop.f32.mrf.mxu1 }
 0x1cf   :  { %518 = dma.done.wait [#allocation3], 128  }
 0x1d0   :  { %519 = vsyncadd [#allocation3], 4294967168 }
 0x1d1   :  { %407 = vsyncpa [#allocation3], 1 }

</bundles_post_ra>
